<compile_context>
chip_gen: v7x
topology: tpu7x:2x2x1
jax: 0.10.0
libtpu: 0.0.40
codegen_flags: <defaults>
</compile_context>

<pallas_src>
import functools
import math

import jax
import jax.numpy as jnp
import numpy as np
from jax.experimental import pallas as pl
from jax.experimental.pallas import tpu as pltpu


def _same_pad(i: int, k: int, s: int, d: int = 1) -> int:
    return max((math.ceil(i / s) - 1) * s + (k - 1) * d + 1 - i, 0)


def _round_up(x: int, m: int) -> int:
    return ((x + m - 1) // m) * m


def _reslayer_kernel(xp1_ref, w1_ref, w2_ref, ws_ref, bn_ref, out_ref, *,
                     N, K, Lo, stride, r_side, j_side, pad2_l, pad2_r,
                     eps, has_side):
    """Fused ResLayer forward (training-mode BatchNorm, batch statistics).

    xp1_ref : (stride, N, Lb, Cp_in) f32 -- conv-1 input, same-padded along L,
              zero-padded along C to a lane multiple, de-strided into a blocked
              layout:  xp1_ref[r, n, j, :] == x_padded[n, j*stride + r, :]
    w1_ref  : (K*Cp_in,  Cp_out) bf16   (tap-major, flattened contraction)
    w2_ref  : (K*Cp_out, Cp_out) bf16
    ws_ref  : (Cp_in,    Cp_out) bf16   (1x1 side conv; zeros when unused)
    bn_ref  : (6, Cp_out) f32           rows: g1, b1, g2, b2, gs, bs
    out_ref : (N, Lo, Cp_out) f32       lane-dense output
    """
    Cp_in = xp1_ref.shape[-1]
    Cp_out = out_ref.shape[-1]
    M = N * Lo

    bnp = bn_ref[...]
    g1, b1 = bnp[0:1, :], bnp[1:2, :]
    g2, b2 = bnp[2:3, :], bnp[3:4, :]
    gs, bs = bnp[4:5, :], bnp[5:6, :]

    def batchnorm(y, g, b, relu):
        # Training-mode BN: batch mean / biased variance over the N*Lo rows.
        # `y` is a value (lives in vregs), so the reductions never re-read
        # VMEM; the centered form is kept for numerical robustness.
        mean = jnp.mean(y, axis=0, keepdims=True)
        var = jnp.mean((y - mean) ** 2, axis=0, keepdims=True)
        yn = (y - mean) * jax.lax.rsqrt(var + eps) * g + b
        return jnp.maximum(yn, 0.0) if relu else yn

    def im2col(taps):
        cat = taps[0] if len(taps) == 1 else jnp.concatenate(taps, axis=-1)
        return cat.reshape(M, cat.shape[-1])

    # ---- conv1 (stride `stride`): one (M, K*Cp_in) @ (K*Cp_in, Cp_out) -----
    # tap k of output position o reads padded position o*stride + k, i.e.
    # block r = k % stride at row offset o + k // stride in the blocked layout.
    taps1 = [
        xp1_ref[k % stride, :, pl.ds(k // stride, Lo), :].astype(jnp.bfloat16)
        for k in range(K)
    ]
    y1 = jnp.dot(im2col(taps1), w1_ref[...], preferred_element_type=jnp.float32)
    a1 = batchnorm(y1, g1, b1, relu=True)

    # ---- conv2 (stride 1): zero only the K-1 halo rows, fold taps + batch ---
    a1b = a1.astype(jnp.bfloat16).reshape(N, Lo, Cp_out)
    parts = []
    if pad2_l:
        parts.append(jnp.zeros((N, pad2_l, Cp_out), jnp.bfloat16))
    parts.append(a1b)
    if pad2_r:
        parts.append(jnp.zeros((N, pad2_r, Cp_out), jnp.bfloat16))
    a1p = parts[0] if len(parts) == 1 else jnp.concatenate(parts, axis=1)
    taps2 = [a1p[:, k:k + Lo, :] for k in range(K)]
    y2 = jnp.dot(im2col(taps2), w2_ref[...], preferred_element_type=jnp.float32)
    a2 = batchnorm(y2, g2, b2, relu=True)

    # ---- side branch / identity residual (reads the same blocked input) ----
    # 1x1 stride-S "same" conv never needs padding, so output o reads x[o*S];
    # in the (left-padded) blocked layout that is block r_side, row j_side + o.
    xs = xp1_ref[r_side, :, pl.ds(j_side, Lo), :]        # (N, Lo, Cp_in) f32
    if has_side:
        ys = jnp.dot(xs.astype(jnp.bfloat16).reshape(M, Cp_in), ws_ref[...],
                     preferred_element_type=jnp.float32)
        side = batchnorm(ys, gs, bs, relu=False)
    else:
        side = xs.reshape(M, Cp_out)                     # exact f32 identity

    out_ref[...] = (a2 + side).reshape(N, Lo, Cp_out).astype(out_ref.dtype)


@functools.partial(jax.jit, static_argnames=("kernel_size", "stride", "eps"))
def res_layer_forward(x_ncl, params, *, kernel_size, stride=1, eps=1e-5):
    """x_ncl: (N, Cin, L) float32 -- mirrors the PyTorch NCL input."""
    N, Cin, L = x_ncl.shape
    K = kernel_size
    S = stride
    Cout = params["w1"].shape[0]
    has_side = (S != 1) or (Cin != Cout)

    Lo = -(-L // S)                                   # ceil(L / stride)
    pad1 = _same_pad(L, K, S)
    pad2 = _same_pad(Lo, K, 1)
    pad1_l = pad1 // 2
    Cp_in = _round_up(Cin, 128)
    Cp_out = _round_up(Cout, 128)

    Lpad = L + pad1
    Lb = -(-Lpad // S)

    # Layout plumbing (fused by XLA under jit): NCL -> NLC, lane-pad channels,
    # same-pad L for conv1, then de-stride into a (S, N, Lb, Cp_in) blocked
    # layout so every conv tap in the kernel is a contiguous load.
    x_nlc = jnp.transpose(x_ncl, (0, 2, 1)).astype(jnp.float32)
    xp1 = jnp.pad(x_nlc, ((0, 0),
                          (pad1_l, (pad1 - pad1_l) + (Lb * S - Lpad)),
                          (0, Cp_in - Cin)))
    xp1_b = jnp.transpose(xp1.reshape(N, Lb, S, Cp_in), (2, 0, 1, 3))

    # torch conv weight (Cout, Cin, K) -> flattened tap-major (K*Cin_p, Cout_p)
    def prep_w(w, cin_p):
        w = jnp.asarray(w, jnp.float32)
        co, ci, k = w.shape
        wt = jnp.transpose(w, (2, 1, 0))              # (K, Cin, Cout)
        wt = jnp.pad(wt, ((0, 0), (0, cin_p - ci), (0, Cp_out - co)))
        return wt.reshape(k * cin_p, Cp_out).astype(jnp.bfloat16)

    w1f = prep_w(params["w1"], Cp_in)
    w2f = prep_w(params["w2"], Cp_out)
    if has_side:
        wsf = prep_w(params["ws"], Cp_in)
    else:
        wsf = jnp.zeros((Cp_in, Cp_out), jnp.bfloat16)

    ones = jnp.ones((Cout,), jnp.float32)
    zeros = jnp.zeros((Cout,), jnp.float32)

    def bn_vec(name, default):
        v = jnp.asarray(params.get(name, default), jnp.float32)
        return jnp.pad(v, (0, Cp_out - Cout))         # padded lanes -> 0

    bn_pack = jnp.stack([bn_vec("g1", ones), bn_vec("b1", zeros),
                         bn_vec("g2", ones), bn_vec("b2", zeros),
                         bn_vec("gs", ones), bn_vec("bs", zeros)], axis=0)

    kernel = functools.partial(
        _reslayer_kernel, N=N, K=K, Lo=Lo, stride=S,
        r_side=pad1_l % S, j_side=pad1_l // S,
        pad2_l=pad2 // 2, pad2_r=pad2 - pad2 // 2,
        eps=eps, has_side=has_side)

    # TODO(synk): for large N*L, tile the row dimension on a grid marked
    # "parallel" (megacore / v7x dual-TC) with a two-phase BN (per-tile
    # sum/sumsq accumulation then a normalize pass) instead of whole-array
    # VMEM residency.
    vmem = pl.BlockSpec(memory_space=pltpu.MemorySpace.VMEM)
    out_nlc = pl.pallas_call(
        kernel,
        out_shape=jax.ShapeDtypeStruct((N, Lo, Cp_out), jnp.float32),
        in_specs=[vmem] * 5,
        out_specs=vmem,
        compiler_params=pltpu.CompilerParams(vmem_limit_bytes=32 * 1024 * 1024),
    )(xp1_b, w1f, w2f, wsf, bn_pack)

    # back to (N, Cout, Lo), dropping the lane padding
    return jnp.transpose(out_nlc[:, :, :Cout], (0, 2, 1))


# ---------------- pure-JAX reference (for correctness check only) -----------
def _ref_forward(x_ncl, params, kernel_size, stride, eps=1e-5):
    def conv_same(x, w, k, s):
        L = x.shape[-1]
        pad = _same_pad(L, k, s)
        xp = jnp.pad(x, ((0, 0), (0, 0), (pad // 2, pad - pad // 2)))
        return jax.lax.conv_general_dilated(
            xp, w, window_strides=(s,), padding="VALID",
            dimension_numbers=("NCH", "OIH", "NCH"))

    def bn(y, g, b, relu):
        mean = jnp.mean(y, axis=(0, 2), keepdims=True)
        var = jnp.mean((y - mean) ** 2, axis=(0, 2), keepdims=True)
        yn = (y - mean) * jax.lax.rsqrt(var + eps) * g[None, :, None] + b[None, :, None]
        return jnp.maximum(yn, 0.0) if relu else yn

    y = bn(conv_same(x_ncl, params["w1"], kernel_size, stride),
           params["g1"], params["b1"], True)
    y = bn(conv_same(y, params["w2"], kernel_size, 1),
           params["g2"], params["b2"], True)
    Cout, Cin = params["w1"].shape[0], params["w1"].shape[1]
    if stride != 1 or Cin != Cout:
        s = bn(conv_same(x_ncl, params["ws"], 1, stride),
               params["gs"], params["bs"], False)
    else:
        s = x_ncl
    return y + s


def _make_params(key, cin, cout, k):
    k1, k2, k3 = jax.random.split(key, 3)
    b_main = 1.0 / math.sqrt(cin * k)
    return {
        "w1": jax.random.uniform(k1, (cout, cin, k), jnp.float32, -b_main, b_main),
        "w2": jax.random.uniform(k2, (cout, cout, k), jnp.float32,
                                 -1.0 / math.sqrt(cout * k), 1.0 / math.sqrt(cout * k)),
        "g1": jnp.ones((cout,), jnp.float32), "b1": jnp.zeros((cout,), jnp.float32),
        "g2": jnp.ones((cout,), jnp.float32), "b2": jnp.zeros((cout,), jnp.float32),
        # side branch (used when stride != 1 or cin != cout)
        "ws": jax.random.uniform(k3, (cout, cin, 1), jnp.float32,
                                 -1.0 / math.sqrt(cin), 1.0 / math.sqrt(cin)),
        "gs": jnp.ones((cout,), jnp.float32), "bs": jnp.zeros((cout,), jnp.float32),
    }


if __name__ == "__main__":
    key = jax.random.PRNGKey(0)
    kx, kp, kp2, kp3 = jax.random.split(key, 4)

    # bf16 matmuls (f32 accumulation) -> looser tolerance vs. the f32 reference
    RTOL = ATOL = 5e-2

    # Config 1: in_channels != out_channels -> side branch (conv1x1 + BN)
    N, Cin, Cout, L, K = 2, 4, 8, 16, 3
    x = jax.random.normal(kx, (N, Cin, L), jnp.float32)
    params = _make_params(kp, Cin, Cout, K)
    out = jax.block_until_ready(res_layer_forward(x, params, kernel_size=K, stride=1))
    ref = _ref_forward(x, params, K, 1)
    np.testing.assert_allclose(np.asarray(out), np.asarray(ref), rtol=RTOL, atol=ATOL)

    # Config 2: in_channels == out_channels, stride == 1 -> identity residual
    params_id = _make_params(kp2, Cout, Cout, K)
    x2 = jax.random.normal(kx, (N, Cout, L), jnp.float32)
    out2 = jax.block_until_ready(res_layer_forward(x2, params_id, kernel_size=K, stride=1))
    ref2 = _ref_forward(x2, params_id, K, 1)
    np.testing.assert_allclose(np.asarray(out2), np.asarray(ref2), rtol=RTOL, atol=ATOL)

    # Config 3: stride == 2 -> side branch + blocked de-stride path
    params_s2 = _make_params(kp3, Cin, Cout, K)
    out3 = jax.block_until_ready(res_layer_forward(x, params_s2, kernel_size=K, stride=2))
    ref3 = _ref_forward(x, params_s2, K, 2)
    np.testing.assert_allclose(np.asarray(out3), np.asarray(ref3), rtol=RTOL, atol=ATOL)

    print("KERNEL_OK")
</pallas_src>

<mosaic_0001>
module attributes {stable_mosaic.version = 11 : i64} {
  func.func @_reslayer_kernel(%arg0: memref<1x2x18x128xf32, #tpu.memory_space<vmem>>, %arg1: memref<384x128xbf16, #tpu.memory_space<vmem>>, %arg2: memref<384x128xbf16, #tpu.memory_space<vmem>>, %arg3: memref<128x128xbf16, #tpu.memory_space<vmem>>, %arg4: memref<6x128xf32, #tpu.memory_space<vmem>>, %arg5: memref<2x16x128xf32, #tpu.memory_space<vmem>>) attributes {dimension_semantics = [], scalar_prefetch = 0 : i64, scratch_operands = 0 : i64, tpu.core_type = #tpu.core_type<tc>} {
    %c0 = arith.constant 0 : index
    %c0_0 = arith.constant 0 : index
    %0 = vector.load %arg4[%c0, %c0_0] : memref<6x128xf32, #tpu.memory_space<vmem>>, vector<6x128xf32>
    %1 = vector.extract_strided_slice %0 {offsets = [0, 0], sizes = [1, 128], strides = [1, 1]} : vector<6x128xf32> to vector<1x128xf32>
    %2 = vector.extract_strided_slice %0 {offsets = [1, 0], sizes = [1, 128], strides = [1, 1]} : vector<6x128xf32> to vector<1x128xf32>
    %3 = vector.extract_strided_slice %0 {offsets = [2, 0], sizes = [1, 128], strides = [1, 1]} : vector<6x128xf32> to vector<1x128xf32>
    %4 = vector.extract_strided_slice %0 {offsets = [3, 0], sizes = [1, 128], strides = [1, 1]} : vector<6x128xf32> to vector<1x128xf32>
    %5 = vector.extract_strided_slice %0 {offsets = [4, 0], sizes = [1, 128], strides = [1, 1]} : vector<6x128xf32> to vector<1x128xf32>
    %6 = vector.extract_strided_slice %0 {offsets = [5, 0], sizes = [1, 128], strides = [1, 1]} : vector<6x128xf32> to vector<1x128xf32>
    %c0_1 = arith.constant 0 : index
    %c0_2 = arith.constant 0 : index
    %c0_3 = arith.constant 0 : index
    %c0_4 = arith.constant 0 : index
    %7 = vector.load %arg0[%c0_1, %c0_2, %c0_3, %c0_4] : memref<1x2x18x128xf32, #tpu.memory_space<vmem>>, vector<1x2x16x128xf32>
    %8 = vector.shape_cast %7 : vector<1x2x16x128xf32> to vector<2x16x128xf32>
    %9 = arith.truncf %8 : vector<2x16x128xf32> to vector<2x16x128xbf16>
    %c0_5 = arith.constant 0 : index
    %c0_6 = arith.constant 0 : index
    %c1 = arith.constant 1 : index
    %c0_7 = arith.constant 0 : index
    %10 = vector.load %arg0[%c0_5, %c0_6, %c1, %c0_7] : memref<1x2x18x128xf32, #tpu.memory_space<vmem>>, vector<1x2x16x128xf32>
    %11 = vector.shape_cast %10 : vector<1x2x16x128xf32> to vector<2x16x128xf32>
    %12 = arith.truncf %11 : vector<2x16x128xf32> to vector<2x16x128xbf16>
    %c0_8 = arith.constant 0 : index
    %c0_9 = arith.constant 0 : index
    %c2 = arith.constant 2 : index
    %c0_10 = arith.constant 0 : index
    %13 = vector.load %arg0[%c0_8, %c0_9, %c2, %c0_10] : memref<1x2x18x128xf32, #tpu.memory_space<vmem>>, vector<1x2x16x128xf32>
    %14 = vector.shape_cast %13 : vector<1x2x16x128xf32> to vector<2x16x128xf32>
    %15 = arith.truncf %14 : vector<2x16x128xf32> to vector<2x16x128xbf16>
    %16 = tpu.concatenate %9, %12, %15 in 2 : vector<2x16x128xbf16>, vector<2x16x128xbf16>, vector<2x16x128xbf16> -> vector<2x16x384xbf16>
    %17 = vector.shape_cast %16 : vector<2x16x384xbf16> to vector<32x384xbf16>
    %c0_11 = arith.constant 0 : index
    %c0_12 = arith.constant 0 : index
    %18 = vector.load %arg1[%c0_11, %c0_12] : memref<384x128xbf16, #tpu.memory_space<vmem>>, vector<384x128xbf16>
    %cst = arith.constant dense<0.000000e+00> : vector<32x128xf32>
    %19 = tpu.matmul %17, %18, %cst {dimension_numbers = #tpu.dot_dimension_numbers<[1], [0], [0], [1], [0, 0, 1, 1], [], []>} : vector<32x384xbf16>, vector<384x128xbf16>, vector<32x128xf32> -> vector<32x128xf32>
    %cst_13 = arith.constant dense<0.000000e+00> : vector<128xf32>
    %20 = vector.multi_reduction <add>, %19, %cst_13 [0] : vector<32x128xf32> to vector<128xf32>
    %21 = vector.shape_cast %20 : vector<128xf32> to vector<1x128xf32>
    %cst_14 = arith.constant 3.200000e+01 : f32
    %22 = vector.broadcast %cst_14 : f32 to vector<1x128xf32>
    %23 = arith.divf %21, %22 : vector<1x128xf32>
    %24 = vector.broadcast %23 : vector<1x128xf32> to vector<32x128xf32>
    %25 = arith.subf %19, %24 : vector<32x128xf32>
    %26 = arith.mulf %25, %25 : vector<32x128xf32>
    %cst_15 = arith.constant dense<0.000000e+00> : vector<128xf32>
    %27 = vector.multi_reduction <add>, %26, %cst_15 [0] : vector<32x128xf32> to vector<128xf32>
    %28 = vector.shape_cast %27 : vector<128xf32> to vector<1x128xf32>
    %cst_16 = arith.constant 3.200000e+01 : f32
    %29 = vector.broadcast %cst_16 : f32 to vector<1x128xf32>
    %30 = arith.divf %28, %29 : vector<1x128xf32>
    %31 = vector.broadcast %23 : vector<1x128xf32> to vector<32x128xf32>
    %32 = arith.subf %19, %31 : vector<32x128xf32>
    %cst_17 = arith.constant 9.99999974E-6 : f32
    %33 = vector.broadcast %cst_17 : f32 to vector<1x128xf32>
    %34 = arith.addf %30, %33 : vector<1x128xf32>
    %35 = math.rsqrt %34 : vector<1x128xf32>
    %36 = vector.broadcast %35 : vector<1x128xf32> to vector<32x128xf32>
    %37 = arith.mulf %32, %36 : vector<32x128xf32>
    %38 = vector.broadcast %1 : vector<1x128xf32> to vector<32x128xf32>
    %39 = arith.mulf %37, %38 : vector<32x128xf32>
    %40 = vector.broadcast %2 : vector<1x128xf32> to vector<32x128xf32>
    %41 = arith.addf %39, %40 : vector<32x128xf32>
    %cst_18 = arith.constant 0.000000e+00 : f32
    %42 = vector.broadcast %cst_18 : f32 to vector<32x128xf32>
    %43 = arith.maximumf %41, %42 : vector<32x128xf32>
    %44 = arith.truncf %43 : vector<32x128xf32> to vector<32x128xbf16>
    %45 = vector.shape_cast %44 : vector<32x128xbf16> to vector<2x16x128xbf16>
    %cst_19 = arith.constant 0.000000e+00 : bf16
    %46 = vector.broadcast %cst_19 : bf16 to vector<2x1x128xbf16>
    %cst_20 = arith.constant 0.000000e+00 : bf16
    %47 = vector.broadcast %cst_20 : bf16 to vector<2x1x128xbf16>
    %48 = tpu.concatenate %46, %45, %47 in 1 : vector<2x1x128xbf16>, vector<2x16x128xbf16>, vector<2x1x128xbf16> -> vector<2x18x128xbf16>
    %49 = vector.extract_strided_slice %48 {offsets = [0, 0, 0], sizes = [2, 16, 128], strides = [1, 1, 1]} : vector<2x18x128xbf16> to vector<2x16x128xbf16>
    %50 = vector.extract_strided_slice %48 {offsets = [0, 1, 0], sizes = [2, 16, 128], strides = [1, 1, 1]} : vector<2x18x128xbf16> to vector<2x16x128xbf16>
    %51 = vector.extract_strided_slice %48 {offsets = [0, 2, 0], sizes = [2, 16, 128], strides = [1, 1, 1]} : vector<2x18x128xbf16> to vector<2x16x128xbf16>
    %52 = tpu.concatenate %49, %50, %51 in 2 : vector<2x16x128xbf16>, vector<2x16x128xbf16>, vector<2x16x128xbf16> -> vector<2x16x384xbf16>
    %53 = vector.shape_cast %52 : vector<2x16x384xbf16> to vector<32x384xbf16>
    %c0_21 = arith.constant 0 : index
    %c0_22 = arith.constant 0 : index
    %54 = vector.load %arg2[%c0_21, %c0_22] : memref<384x128xbf16, #tpu.memory_space<vmem>>, vector<384x128xbf16>
    %cst_23 = arith.constant dense<0.000000e+00> : vector<32x128xf32>
    %55 = tpu.matmul %53, %54, %cst_23 {dimension_numbers = #tpu.dot_dimension_numbers<[1], [0], [0], [1], [0, 0, 1, 1], [], []>} : vector<32x384xbf16>, vector<384x128xbf16>, vector<32x128xf32> -> vector<32x128xf32>
    %cst_24 = arith.constant dense<0.000000e+00> : vector<128xf32>
    %56 = vector.multi_reduction <add>, %55, %cst_24 [0] : vector<32x128xf32> to vector<128xf32>
    %57 = vector.shape_cast %56 : vector<128xf32> to vector<1x128xf32>
    %cst_25 = arith.constant 3.200000e+01 : f32
    %58 = vector.broadcast %cst_25 : f32 to vector<1x128xf32>
    %59 = arith.divf %57, %58 : vector<1x128xf32>
    %60 = vector.broadcast %59 : vector<1x128xf32> to vector<32x128xf32>
    %61 = arith.subf %55, %60 : vector<32x128xf32>
    %62 = arith.mulf %61, %61 : vector<32x128xf32>
    %cst_26 = arith.constant dense<0.000000e+00> : vector<128xf32>
    %63 = vector.multi_reduction <add>, %62, %cst_26 [0] : vector<32x128xf32> to vector<128xf32>
    %64 = vector.shape_cast %63 : vector<128xf32> to vector<1x128xf32>
    %cst_27 = arith.constant 3.200000e+01 : f32
    %65 = vector.broadcast %cst_27 : f32 to vector<1x128xf32>
    %66 = arith.divf %64, %65 : vector<1x128xf32>
    %67 = vector.broadcast %59 : vector<1x128xf32> to vector<32x128xf32>
    %68 = arith.subf %55, %67 : vector<32x128xf32>
    %cst_28 = arith.constant 9.99999974E-6 : f32
    %69 = vector.broadcast %cst_28 : f32 to vector<1x128xf32>
    %70 = arith.addf %66, %69 : vector<1x128xf32>
    %71 = math.rsqrt %70 : vector<1x128xf32>
    %72 = vector.broadcast %71 : vector<1x128xf32> to vector<32x128xf32>
    %73 = arith.mulf %68, %72 : vector<32x128xf32>
    %74 = vector.broadcast %3 : vector<1x128xf32> to vector<32x128xf32>
    %75 = arith.mulf %73, %74 : vector<32x128xf32>
    %76 = vector.broadcast %4 : vector<1x128xf32> to vector<32x128xf32>
    %77 = arith.addf %75, %76 : vector<32x128xf32>
    %cst_29 = arith.constant 0.000000e+00 : f32
    %78 = vector.broadcast %cst_29 : f32 to vector<32x128xf32>
    %79 = arith.maximumf %77, %78 : vector<32x128xf32>
    %c0_30 = arith.constant 0 : index
    %c0_31 = arith.constant 0 : index
    %c1_32 = arith.constant 1 : index
    %c0_33 = arith.constant 0 : index
    %80 = vector.load %arg0[%c0_30, %c0_31, %c1_32, %c0_33] : memref<1x2x18x128xf32, #tpu.memory_space<vmem>>, vector<1x2x16x128xf32>
    %81 = vector.shape_cast %80 : vector<1x2x16x128xf32> to vector<2x16x128xf32>
    %82 = arith.truncf %81 : vector<2x16x128xf32> to vector<2x16x128xbf16>
    %83 = vector.shape_cast %82 : vector<2x16x128xbf16> to vector<32x128xbf16>
    %c0_34 = arith.constant 0 : index
    %c0_35 = arith.constant 0 : index
    %84 = vector.load %arg3[%c0_34, %c0_35] : memref<128x128xbf16, #tpu.memory_space<vmem>>, vector<128x128xbf16>
    %cst_36 = arith.constant dense<0.000000e+00> : vector<32x128xf32>
    %85 = tpu.matmul %83, %84, %cst_36 {dimension_numbers = #tpu.dot_dimension_numbers<[1], [0], [0], [1], [0, 0, 1, 1], [], []>} : vector<32x128xbf16>, vector<128x128xbf16>, vector<32x128xf32> -> vector<32x128xf32>
    %cst_37 = arith.constant dense<0.000000e+00> : vector<128xf32>
    %86 = vector.multi_reduction <add>, %85, %cst_37 [0] : vector<32x128xf32> to vector<128xf32>
    %87 = vector.shape_cast %86 : vector<128xf32> to vector<1x128xf32>
    %cst_38 = arith.constant 3.200000e+01 : f32
    %88 = vector.broadcast %cst_38 : f32 to vector<1x128xf32>
    %89 = arith.divf %87, %88 : vector<1x128xf32>
    %90 = vector.broadcast %89 : vector<1x128xf32> to vector<32x128xf32>
    %91 = arith.subf %85, %90 : vector<32x128xf32>
    %92 = arith.mulf %91, %91 : vector<32x128xf32>
    %cst_39 = arith.constant dense<0.000000e+00> : vector<128xf32>
    %93 = vector.multi_reduction <add>, %92, %cst_39 [0] : vector<32x128xf32> to vector<128xf32>
    %94 = vector.shape_cast %93 : vector<128xf32> to vector<1x128xf32>
    %cst_40 = arith.constant 3.200000e+01 : f32
    %95 = vector.broadcast %cst_40 : f32 to vector<1x128xf32>
    %96 = arith.divf %94, %95 : vector<1x128xf32>
    %97 = vector.broadcast %89 : vector<1x128xf32> to vector<32x128xf32>
    %98 = arith.subf %85, %97 : vector<32x128xf32>
    %cst_41 = arith.constant 9.99999974E-6 : f32
    %99 = vector.broadcast %cst_41 : f32 to vector<1x128xf32>
    %100 = arith.addf %96, %99 : vector<1x128xf32>
    %101 = math.rsqrt %100 : vector<1x128xf32>
    %102 = vector.broadcast %101 : vector<1x128xf32> to vector<32x128xf32>
    %103 = arith.mulf %98, %102 : vector<32x128xf32>
    %104 = vector.broadcast %5 : vector<1x128xf32> to vector<32x128xf32>
    %105 = arith.mulf %103, %104 : vector<32x128xf32>
    %106 = vector.broadcast %6 : vector<1x128xf32> to vector<32x128xf32>
    %107 = arith.addf %105, %106 : vector<32x128xf32>
    %108 = arith.addf %79, %107 : vector<32x128xf32>
    %109 = vector.shape_cast %108 : vector<32x128xf32> to vector<2x16x128xf32>
    %c0_42 = arith.constant 0 : index
    %c0_43 = arith.constant 0 : index
    %c0_44 = arith.constant 0 : index
    %110 = vector.load %arg5[%c0_42, %c0_43, %c0_44] : memref<2x16x128xf32, #tpu.memory_space<vmem>>, vector<2x16x128xf32>
    tpu.vector_store %arg5[%c0_42, %c0_43, %c0_44], %109 {strides = array<i32>} : memref<2x16x128xf32, #tpu.memory_space<vmem>>, vector<2x16x128xf32>,
    return
  }
}

</mosaic_0001>

<bundles_post_ra>
// kernel: res_layer_forward.1
= control target key start
LH: loop header
LB: loop body
LE: loop exit
PB: predicated region body
PF: predicated region fallthrough
CT: control target
= control target key end

     0   :  { %vm405_vm0 = vcmask 1040384   ;;  %vm406_vm1 = vsmask.f32 256  ;;  %vm443_vm3 = vcmask 1046528   ;;  %vm412_vm4 = vsmask.f32 7424  ;;  %s1512_s1 = inlined_call_operand.vmem [shape: bf16[384,128], index: 1, kind: input, shape index: {}]   ;;  %s1513_s0 = inlined_call_operand.vmem [shape: f32[1,2,18,128], index: 0, kind: input, shape index: {}]   ;;  %s1514_s2 = inlined_call_operand.vmem [shape: bf16[384,128], index: 2, kind: input, shape index: {}]   ;;  %s1515_s3 = inlined_call_operand.vmem [shape: bf16[128,128], index: 3, kind: input, shape index: {}]   ;;  %s1516_s4 = inlined_call_operand.vmem [shape: f32[6,128], index: 4, kind: input, shape index: {}]   ;;  %s1517_s5 = inlined_call_operand.vmem [shape: f32[2,16,128], index: 5, kind: output, shape index: {}]  }
   0x1   :  { %v1173_v0 = vld [vmem:[%s1512_s1 + $0x40] sm:$0xff]   ;;  %v1176_v3 = vld [vmem:[%s1512_s1 + $0x48] sm:$0xff]   ;;  %v1179_v6 = vld [vmem:[%s1512_s1 + $0x50] sm:$0xff]  }
   0x2   :  { %v1174_v1 = vld [vmem:[%s1512_s1] sm:$0xff]   ;;  %1027 = vmatprep.subr.bf16.mxu0 %v1173_v0  ;;  %v1177_v4 = vld [vmem:[%s1512_s1 + $0x8] sm:$0xff]   ;;  %v1180_v7 = vld [vmem:[%s1512_s1 + $0x10] sm:$0xff]  }
   0x3   :  { %v1175_v2 = vld [vmem:[%s1512_s1 + $0x80] sm:$0xff]   ;;  %1028 = vmatpush3.bf16.msra.mxu0 %v1174_v1  ;;  %v1178_v5 = vld [vmem:[%s1512_s1 + $0x88] sm:$0xff]   ;;  %v1181_v8 = vld [vmem:[%s1512_s1 + $0x90] sm:$0xff]  }
   0x4   :  { %1113 = vmatprep.subr.bf16.mxu1 %v1175_v2  ;;  %1029 = vmatprep.subr.bf16.mxu0 %v1176_v3  ;;  %v1182_v9 = vld [vmem:[%s1512_s1 + $0x58] sm:$0xff]   ;;  %v1185_v12 = vld [vmem:[%s1512_s1 + $0x60] sm:$0xff]   ;;  %v1188_v15 = vld [vmem:[%s1512_s1 + $0x68] sm:$0xff]  }
   0x5   :  { %1114 = vmatpush3.bf16.msra.mxu1 %v1175_v2  ;;  %v1183_v10 = vld [vmem:[%s1512_s1 + $0x18] sm:$0xff]   ;;  %v1187_v13 = vld [vmem:[%s1512_s1 + $0xa0] sm:$0xff]   ;;  %v1190_v16 = vld [vmem:[%s1512_s1 + $0xa8] sm:$0xff]  }
   0x6   :  { %1115 = vmatprep.subr.bf16.mxu1 %v1178_v5  ;;  %v1184_v11 = vld [vmem:[%s1512_s1 + $0x98] sm:$0xff]   ;;  %v1186_v14 = vld [vmem:[%s1512_s1 + $0x20] sm:$0xff]   ;;  %v1189_v17 = vld [vmem:[%s1512_s1 + $0x28] sm:$0xff]  }
   0x7   :  { %1030 = vmatpush3.bf16.msra.mxu0 %v1177_v4  ;;  %v1191_v18 = vld [vmem:[%s1512_s1 + $0x70] sm:$0xff]   ;;  %v1194_v21 = vld [vmem:[%s1512_s1 + $0x78] sm:$0xff]   ;;  %v28_v22 = vld [vmem:[%s1513_s0 + $0x1] sm:$0xff] }
   0x8   :  { %1031 = vmatprep.subr.bf16.mxu0 %v1179_v6  ;;  %v1193_v19 = vld [vmem:[%s1512_s1 + $0xb0] sm:$0xff]   ;;  %v34_v25 = vld [vmem:[%s1513_s0 + $0x2] sm:$0xff]  ;;  %v1196_v27 = vld [vmem:[%s1512_s1 + $0xb8] sm:$0xff]  }
   0x9   :  { %1116 = vmatpush3.bf16.msra.mxu1 %v1178_v5  ;;  %v1192_v20 = vld [vmem:[%s1512_s1 + $0x30] sm:$0xff]   ;;  %v1195_v29 = vld [vmem:[%s1512_s1 + $0x38] sm:$0xff]   ;;  %v22_v30 = vld [vmem:[%s1513_s0] sm:$0xff] }
   0xa   :  { %1117 = vmatprep.subr.bf16.mxu1 %v1181_v8  ;;  %v29_v23 = vld [vmem:[%s1513_s0 + $0x9] sm:$0xff]  ;;  %v30_v32 = vld [vmem:[%s1513_s0 + $0x19] sm:$0xff]  ;;  %v31_v33 = vld [vmem:[%s1513_s0 + $0x21] sm:$0xff] }
   0xb   :  { %1032 = vmatpush3.bf16.msra.mxu0 %v1180_v7  ;;  %v1337_v24 = vpack.c.bf16 %v29_v23, %v28_v22  ;;  %v35_v26 = vld [vmem:[%s1513_s0 + $0xa] sm:$0xff]  ;;  %v36_v34 = vld [vmem:[%s1513_s0 + $0x1a] sm:$0xff]  ;;  %v37_v35 = vld [vmem:[%s1513_s0 + $0x22] sm:$0xff]  ;;  %v1370_v37 = vpack.c.bf16 %v31_v33, %v30_v32 }
   0xc   :  { %1033 = vmatprep.subr.bf16.mxu0 %v1182_v9  ;;  %v38_v28 = vpack.c.bf16 %v35_v26, %v34_v25  ;;  %v23_v31 = vld [vmem:[%s1513_s0 + $0x8] sm:$0xff]  ;;  %v39_v38 = vpack.c.bf16 %v37_v35, %v36_v34  ;;  %v24_v39 = vld [vmem:[%s1513_s0 + $0x18] sm:$0xff]  ;;  %v25_v40 = vld [vmem:[%s1513_s0 + $0x20] sm:$0xff] }
   0xd   :  { %1118 = vmatpush3.bf16.msra.mxu1 %v1181_v8  ;;  %264 = vmatprep.mubr.bf16.mxu0 %v1337_v24  ;;  %v26_v36 = vpack.c.bf16 %v23_v31, %v22_v30  ;;  %v27_v41 = vpack.c.bf16 %v25_v40, %v24_v39  ;;  %v1197_v42 = vld [vmem:[%s1514_s2 + $0x80] sm:$0xff]   ;;  %v1200_v45 = vld [vmem:[%s1514_s2 + $0x88] sm:$0xff]   ;;  %v1203_v48 = vld [vmem:[%s1514_s2 + $0x90] sm:$0xff]  }
   0xe   :  { %1119 = vmatprep.subr.bf16.mxu1 %v1184_v11  ;;  %1129 = vmatprep.mubr.bf16.mxu1 %v38_v28  ;;  %v1198_v43 = vld [vmem:[%s1514_s2 + $0x40] sm:$0xff]   ;;  %v1201_v46 = vld [vmem:[%s1514_s2 + $0x48] sm:$0xff]   ;;  %v1204_v49 = vld [vmem:[%s1514_s2 + $0x50] sm:$0xff]  }
   0xf   :  { %1034 = vmatpush3.bf16.msra.mxu0 %v1183_v10  ;;  %v1199_v44 = vld [vmem:[%s1514_s2] sm:$0xff]   ;;  %v1202_v47 = vld [vmem:[%s1514_s2 + $0x8] sm:$0xff]   ;;  %v1205_v50 = vld [vmem:[%s1514_s2 + $0x10] sm:$0xff]  }
  0x10   :  { %1035 = vmatprep.subr.bf16.mxu0 %v1185_v12  ;;  %v1206_v51 = vld [vmem:[%s1514_s2 + $0x98] sm:$0xff]   ;;  %v1209_v54 = vld [vmem:[%s1514_s2 + $0xa0] sm:$0xff]   ;;  %v1212_v57 = vld [vmem:[%s1514_s2 + $0xa8] sm:$0xff]  }
  0x11   :  { %1120 = vmatpush3.bf16.msra.mxu1 %v1184_v11  ;;  %v1207_v52 = vld [vmem:[%s1514_s2 + $0x58] sm:$0xff]   ;;  %v1210_v55 = vld [vmem:[%s1514_s2 + $0x60] sm:$0xff]   ;;  %v1213_v58 = vld [vmem:[%s1514_s2 + $0x68] sm:$0xff]  }
  0x12   :  { %1121 = vmatprep.subr.bf16.mxu1 %v1187_v13  ;;  %v1208_v53 = vld [vmem:[%s1514_s2 + $0x18] sm:$0xff]   ;;  %v1211_v56 = vld [vmem:[%s1514_s2 + $0x20] sm:$0xff]   ;;  %v1215_v59 = vld [vmem:[%s1514_s2 + $0xb0] sm:$0xff]  }
  0x13   :  { %1036 = vmatpush3.bf16.msra.mxu0 %v1186_v14  ;;  %v1214_v60 = vld [vmem:[%s1514_s2 + $0x28] sm:$0xff]   ;;  %v1216_v61 = vld [vmem:[%s1514_s2 + $0x70] sm:$0xff]   ;;  %v1218_v62 = vld [vmem:[%s1514_s2 + $0xb8] sm:$0xff]  }
  0x14   :  { %1037 = vmatprep.subr.bf16.mxu0 %v1188_v15  ;;  %v1217_v63 = vld [vmem:[%s1514_s2 + $0x30] sm:$0xff]   ;;  %v1219_v0 = vld [vmem:[%s1514_s2 + $0x78] sm:$0xff]   ;;  %v1454_v2 = vld [vmem:[%s1515_s3] sm:$0xff]  }
  0x15   :  { %1122 = vmatpush3.bf16.msra.mxu1 %v1187_v13  ;;  %v1220_v1 = vld [vmem:[%s1514_s2 + $0x38] sm:$0xff]   ;;  %vm407_vm2 = vmand %vm405_vm0, %vm406_vm1 }
  0x16   :  { %1123 = vmatprep.subr.bf16.mxu1 %v1190_v16 }
  0x17   :  { %1038 = vmatpush3.bf16.msra.mxu0 %v1189_v17 }
  0x18   :  { %1039 = vmatprep.subr.bf16.mxu0 %v1191_v18 }
  0x19   :  { %1124 = vmatpush3.bf16.msra.mxu1 %v1190_v16 }
  0x1a   :  { %1125 = vmatprep.subr.bf16.mxu1 %v1193_v19 }
  0x1b   :  { %1040 = vmatpush3.bf16.msra.mxu0 %v1192_v20 }
  0x1c   :  { %1041 = vmatprep.subr.bf16.mxu0 %v1194_v21 }
  0x1d   :  { %1126 = vmatpush3.bf16.msra.mxu1 %v1193_v19 }
  0x1e   :  { %1127 = vmatprep.subr.bf16.mxu1 %v1196_v27 }
  0x1f   :  { %1042 = vmatpush3.bf16.msra.mxu0 %v1195_v29 }
  0x20   :  { %1065 = vmatprep.subr.bf16.mxu0 %v1198_v43 }
  0x21   :  { %1128 = vmatpush3.bf16.msra.mxu1 %v1196_v27 }
  0x22   :  { %265 = vmatmul.mubr.bf16.vlgmr.msra.gmra.mrb[0].mxu0 %v26_v36  ;;  %1133 = vmatprep.subr.bf16.mxu1 %v1197_v42 }
  0x23   :  { %272 = vmatprep.mubr.bf16.mxu0 %v1370_v37  ;;  %1066 = vmatpush3.bf16.msra.mxu0 %v1199_v44 }
  0x24   :  { %1130 = vmatmul.mubr.bf16.vlgmr.msra.gmra.mrb[0].mxu1 %v39_v38  ;;  %1067 = vmatprep.subr.bf16.mxu0 %v1201_v46 }
  0x25   :  { %1134 = vmatpush3.bf16.msra.mxu1 %v1197_v42 }
  0x26   :  { %1135 = vmatprep.subr.bf16.mxu1 %v1200_v45 }
  0x27   :  { %1068 = vmatpush3.bf16.msra.mxu0 %v1202_v47 }
  0x28   :  { %1069 = vmatprep.subr.bf16.mxu0 %v1204_v49 }
  0x29   :  { %1136 = vmatpush3.bf16.msra.mxu1 %v1200_v45 }
  0x2a   :  { %273 = vmatmul.mubr.bf16.gmra.mrb[4].mxu0 %v27_v41  ;;  %1137 = vmatprep.subr.bf16.mxu1 %v1203_v48 }
  0x2b   :  { %1070 = vmatpush3.bf16.msra.mxu0 %v1205_v50 }
  0x2c   :  { %1071 = vmatprep.subr.bf16.mxu0 %v1207_v52 }
  0x2d   :  { %1138 = vmatpush3.bf16.msra.mxu1 %v1203_v48 }
  0x2e   :  { %1139 = vmatprep.subr.bf16.mxu1 %v1206_v51 }
  0x2f   :  { %1072 = vmatpush3.bf16.msra.mxu0 %v1208_v53  ;;  %v365_v53 = vlaneseq }
  0x30   :  { %1073 = vmatprep.subr.bf16.mxu0 %v1210_v55 }
  0x31   :  { %1140 = vmatpush3.bf16.msra.mxu1 %v1206_v51  ;;  %v1457_v55 = vshrl.u32 %v365_v53, 7  ;;  %v1224_v53 = vld [vmem:[%s1515_s3 + $0x18] sm:$0xff]  }
  0x32   :  { %1141 = vmatprep.subr.bf16.mxu1 %v1209_v54 }
  0x33   :  { %1074 = vmatpush3.bf16.msra.mxu0 %v1211_v56  ;;  %v367_v56 = vsub.s32 0, %v1457_v55 }
  0x34   :  { %1075 = vmatprep.subr.bf16.mxu0 %v1213_v58  ;;  %v375_v58 = vsub.s32 1, %v1457_v55 }
  0x35   :  { %1142 = vmatpush3.bf16.msra.mxu1 %v1209_v54 }
  0x36   :  { %1143 = vmatprep.subr.bf16.mxu1 %v1212_v57 }
  0x37   :  { %1076 = vmatpush3.bf16.msra.mxu0 %v1214_v60 }
  0x38   :  { %1077 = vmatprep.subr.bf16.mxu0 %v1216_v61 }
  0x39   :  { %1144 = vmatpush3.bf16.msra.mxu1 %v1212_v57  ;;  %v1463_v57 = vld [vmem:[%s1516_s4] sm:$0x3f] }
  0x3a   :  { %1145 = vmatprep.subr.bf16.mxu1 %v1215_v59  ;;  %v376_v61 = vrot.slane %v1463_v57, %v375_v58 }
  0x3b   :  { %1078 = vmatpush3.bf16.msra.mxu0 %v1217_v63 }
  0x3c   :  { %1079 = vmatprep.subr.bf16.mxu0 %v1219_v0 }
  0x3d   :  { %1146 = vmatpush3.bf16.msra.mxu1 %v1215_v59  ;;  %v368_v59 = vrot.slane %v1463_v57, %v367_v56  ;;  %v1227_v56 = vld [vmem:[%s1515_s3 + $0x30] sm:$0xff]  }
  0x3e   :  { %1147 = vmatprep.subr.bf16.mxu1 %v1218_v62 }
  0x3f   :  { %1080 = vmatpush3.bf16.msra.mxu0 %v1220_v1 }
  0x40   :  { %1153 = vmatprep.subr.bf16.mxu0 %v1454_v2 }
  0x41   :  { %1148 = vmatpush3.bf16.msra.mxu1 %v1218_v62 }
  0xf5   :  { %v1043_v3 = vpop.f32.mrb[0].mxu0 }
  0xf6   :  { %v1044_v4 = vpop.f32.mrb[1].mxu0 }
  0xf7   :  { %v1045_v5 = vadd.f32 %v1044_v4, %v1043_v3  ;;  %v1046_v6 = vpop.f32.mrb[2].mxu0  ;;  %v1131_v7 = vpop.f32.mrb[0].mxu1 }
  0xf8   :  { %v1047_v8 = vpop.f32.mrb[3].mxu0  ;;  %v315_v9 = vpop.f32.mrb[1].mxu1 }
  0xf9   :  { %v1048_v10 = vadd.f32 %v1047_v8, %v1046_v6  ;;  %v316_v11 = vadd.f32 %v1045_v5, %v315_v9  ;;  %v1132_v12 = vpop.f32.mrb[2].mxu1 }
  0xfa   :  { %v318_v13 = vpop.f32.mrb[3].mxu1 }
  0xfb   :  { %v319_v14 = vadd.f32 %v1048_v10, %v318_v13 }
  0xfd   :  { %v330_v15 = vadd.f32 %v319_v14, %v316_v11  ;;  %v1049_v16 = vpop.f32.mrb[4].mxu0 }
  0xfe   :  { %v1050_v17 = vpop.f32.mrb[5].mxu0 }
  0xff   :  { %v1051_v18 = vadd.f32 %v1050_v17, %v1049_v16  ;;  %v1052_v19 = vpop.f32.mrb[6].mxu0 }
 0x100   :  { %v1053_v20 = vpop.f32.mrb[7].mxu0 }
 0x101   :  { %v324_v21 = vadd.f32 %v1131_v7, %v1051_v18  ;;  %v1054_v22 = vadd.f32 %v1053_v20, %v1052_v19 }
 0x103   :  { %v331_v23 = vadd.f32 %v330_v15, %v324_v21  ;;  %v327_v25 = vadd.f32 %v1132_v12, %v1054_v22 }
 0x105   :  { %v332_v26 = vadd.f32 %v331_v23, %v327_v25 }
 0x107   :  { %v333_v27 = vrot.slane %v332_v26, 4 }
 0x109   :  { %v334_v28 = vadd.f32 %v333_v27, %v332_v26 }
 0x10b   :  { %v335_v29 = vrot.slane %v334_v28, 2 }
 0x10d   :  { %v336_v30 = vadd.f32 %v335_v29, %v334_v28 }
 0x10f   :  { %v337_v31 = vrot.slane %v336_v30, 1 }
 0x111   :  { %v338_v32 = vadd.f32 %v337_v31, %v336_v30 }
 0x113   :  { %v340_v33 = vmul.f32 0.03125, %v338_v32 }
 0x115   :  { %v341_v34 = vsub.f32 %v316_v11, %v340_v33  ;;  %v342_v35 = vsub.f32 %v319_v14, %v340_v33  ;;  %v343_v36 = vsub.f32 %v324_v21, %v340_v33  ;;  %v344_v38 = vsub.f32 %v327_v25, %v340_v33 }
 0x117   :  { %v345_v39 = vmul.f32 %v341_v34, %v341_v34  ;;  %v346_v40 = vmul.f32 %v342_v35, %v342_v35  ;;  %v347_v41 = vmul.f32 %v343_v36, %v343_v36  ;;  %v348_v43 = vmul.f32 %v344_v38, %v344_v38 }
 0x119   :  { %v349_v42 = vadd.f32 %v346_v40, %v345_v39 }
 0x11b   :  { %v350_v44 = vadd.f32 %v349_v42, %v347_v41 }
 0x11d   :  { %v351_v45 = vadd.f32 %v350_v44, %v348_v43 }
 0x11f   :  { %v352_v46 = vrot.slane %v351_v45, 4 }
 0x121   :  { %v353_v47 = vadd.f32 %v352_v46, %v351_v45 }
 0x123   :  { %v354_v48 = vrot.slane %v353_v47, 2 }
 0x125   :  { %v355_v49 = vadd.f32 %v354_v48, %v353_v47 }
 0x127   :  { %v356_v50 = vrot.slane %v355_v49, 1 }
 0x129   :  { %v357_v51 = vadd.f32 %v356_v50, %v355_v49  ;;  %v1222_v50 = vld [vmem:[%s1515_s3 + $0x8] sm:$0xff]  }
 0x12b   :  { %v358_v52 = vmul.f32 0.03125, %v357_v51 }
 0x12d   :  { %v359_v54 = vadd.f32 1e-05, %v358_v52  ;;  %v1223_v52 = vld [vmem:[%s1515_s3 + $0x10] sm:$0xff]  }
 0x12f   :  { %1229 = vrsqrt.f32 %v359_v54  ;;  %v1226_v54 = vld [vmem:[%s1515_s3 + $0x28] sm:$0xff]  }
 0x139   :  { %v1230_v60 = vpop.eup %1229 }
 0x13a   :  { %v363_v62 = vmul.f32 %v1230_v60, %v343_v36  ;;  %v364_v63 = vmul.f32 %v1230_v60, %v344_v38  ;;  %v361_v0 = vmul.f32 %v1230_v60, %v341_v34  ;;  %v362_v1 = vmul.f32 %v1230_v60, %v342_v35 }
 0x13c   :  { %v371_v3 = vmul.f32 %v368_v59, %v363_v62  ;;  %v372_v4 = vmul.f32 %v368_v59, %v364_v63  ;;  %v369_v5 = vmul.f32 %v368_v59, %v361_v0  ;;  %v370_v6 = vmul.f32 %v368_v59, %v362_v1 }
 0x13e   :  { %v379_v7 = vadd.f32 %v376_v61, %v371_v3  ;;  %v380_v8 = vadd.f32 %v376_v61, %v372_v4  ;;  %v377_v9 = vadd.f32 %v376_v61, %v369_v5  ;;  %v378_v10 = vadd.f32 %v376_v61, %v370_v6 }
 0x140   :  { %v383_v11 = vmax.f32 %v379_v7, 0.0  ;;  %v384_v12 = vmax.f32 %v380_v8, 0.0  ;;  %v381_v13 = vmax.f32 %v377_v9, 0.0  ;;  %v382_v14 = vmax.f32 %v378_v10, 0.0 }
 0x142   :  { %v386_v15 = vpack.c.bf16 %v384_v12, %v383_v11  ;;  %v385_v16 = vpack.c.bf16 %v382_v14, %v381_v13 }
 0x144   :  { %v388_v17 = vshrl.u32 %v385_v16, 16  ;;  %v395_v18 = vshrl.u32 %v386_v15, 16  ;;  %v391_v20 = vshll.u32 %v385_v16, 16  ;;  %v398_v22 = vshll.u32 %v386_v15, 16 }
 0x146   :  { %v390_v19 = vrot.slane %v388_v17, 7  ;;  %v397_v21 = vrot.slane %v395_v18, 7 }
 0x148   :  { %v393_v23 = vor.u32 %v391_v20, %v390_v19  ;;  %v410_v25 = vsel %vm407_vm2, %v390_v19, 0  ;;  %v400_v26 = vor.u32 %v398_v22, %v397_v21  ;;  %v411_v27 = vsel %vm407_vm2, %v397_v21, 0 }
 0x149   :  { %v445_v29 = vrot.slane %v410_v25, 1  ;;  %v448_v31 = vrot.slane %v411_v27, 1  ;;  %v421_v35 = vshll.u32 %v410_v25, 16  ;;  %v433_v38 = vshll.u32 %v411_v27, 16 }
 0x14a   :  { %v408_v28 = vsel %vm407_vm2, 0, %v393_v23  ;;  %v409_v30 = vsel %vm407_vm2, 0, %v400_v26 }
 0x14b   :  { %v444_v32 = vrot.slane %v408_v28, 1  ;;  %v447_v33 = vrot.slane %v409_v30, 1  ;;  %v416_v34 = vshll.u32 %v408_v28, 16  ;;  %v428_v36 = vshll.u32 %v409_v30, 16 }
 0x14c   :  { %v414_v41 = vshrl.u32 %v408_v28, 16  ;;  %v426_v43 = vshrl.u32 %v409_v30, 16  ;;  %v423_v46 = vrot.slane %v421_v35, 1  ;;  %v435_v49 = vrot.slane %v433_v38, 1 }
 0x14d   :  { %v446_v39 = vsel %vm443_vm3, %v444_v32, %v445_v29  ;;  %v449_v40 = vsel %vm443_vm3, %v447_v33, %v448_v31  ;;  %v418_v42 = vrot.slane %v416_v34, 1  ;;  %v430_v44 = vrot.slane %v428_v36, 1 }
 0x14e   :  { %1149 = vmatprep.mubr.bf16.mxu1 %v446_v39 }
 0x14f   :  { %1150 = vmatmul.mubr.bf16.vlgmr.msra.gmra.mrb[4].mxu1 %v449_v40  ;;  %v419_v45 = vor.u32 %v418_v42, %v414_v41  ;;  %v431_v47 = vor.u32 %v430_v44, %v426_v43 }
 0x151   :  { %v424_v48 = vsel %vm412_vm4, %v419_v45, %v423_v46  ;;  %v436_v51 = vsel %vm412_vm4, %v431_v47, %v435_v49 }
 0x152   :  { %676 = vmatprep.mubr.bf16.mxu0 %v424_v48 }
 0x153   :  { %677 = vmatmul.mubr.bf16.vlgmr.msra.gmra.mrb[8].mxu0 %v408_v28 }
 0x154   :  { %1154 = vmatpush3.bf16.msra.mxu0 %v1454_v2  ;;  %684 = vmatprep.mubr.bf16.mxu0 %v436_v51  ;;  %v1225_v2 = vld [vmem:[%s1515_s3 + $0x20] sm:$0xff]  }
 0x155   :  { %1155 = vmatprep.subr.bf16.mxu0 %v1222_v50 }
 0x158   :  { %1156 = vmatpush3.bf16.msra.mxu0 %v1222_v50 }
 0x159   :  { %1157 = vmatprep.subr.bf16.mxu0 %v1223_v52 }
 0x15b   :  { %685 = vmatmul.mubr.bf16.gmra.mrb[12].mxu0 %v409_v30 }
 0x15c   :  { %1158 = vmatpush3.bf16.msra.mxu0 %v1223_v52  ;;  %1169 = vmatprep.mubr.bf16.mxu0 %v1337_v24  ;;  %v1228_v24 = vld [vmem:[%s1515_s3 + $0x38] sm:$0xff]  }
 0x15d   :  { %1159 = vmatprep.subr.bf16.mxu0 %v1224_v53 }
 0x160   :  { %1160 = vmatpush3.bf16.msra.mxu0 %v1224_v53 }
 0x161   :  { %1161 = vmatprep.subr.bf16.mxu0 %v1225_v2 }
 0x164   :  { %1162 = vmatpush3.bf16.msra.mxu0 %v1225_v2 }
 0x165   :  { %1163 = vmatprep.subr.bf16.mxu0 %v1226_v54 }
 0x168   :  { %1164 = vmatpush3.bf16.msra.mxu0 %v1226_v54 }
 0x169   :  { %1165 = vmatprep.subr.bf16.mxu0 %v1227_v56 }
 0x16c   :  { %1166 = vmatpush3.bf16.msra.mxu0 %v1227_v56 }
 0x16d   :  { %1167 = vmatprep.subr.bf16.mxu0 %v1228_v24 }
 0x170   :  { %1168 = vmatpush3.bf16.msra.mxu0 %v1228_v24 }
 0x173   :  { %1170 = vmatmul.mubr.bf16.vlgmr.msra.gmra.mrb[16].mxu0 %v1370_v37 }
 0x222   :  { %v1151_v58 = vpop.f32.mrb[4].mxu1 }
 0x223   :  { %v727_v59 = vpop.f32.mrb[5].mxu1 }
 0x224   :  { %v1152_v60 = vpop.f32.mrb[6].mxu1 }
 0x225   :  { %v730_v61 = vpop.f32.mrb[7].mxu1 }
 0x226   :  { %v1081_v62 = vpop.f32.mrb[8].mxu0 }
 0x227   :  { %v1082_v63 = vpop.f32.mrb[9].mxu0 }
 0x228   :  { %v1083_v0 = vadd.f32 %v1082_v63, %v1081_v62  ;;  %v1084_v1 = vpop.f32.mrb[10].mxu0 }
 0x229   :  { %v1085_v3 = vpop.f32.mrb[11].mxu0 }
 0x22a   :  { %v728_v4 = vadd.f32 %v1083_v0, %v727_v59  ;;  %v1086_v5 = vadd.f32 %v1085_v3, %v1084_v1 }
 0x22c   :  { %v731_v6 = vadd.f32 %v1086_v5, %v730_v61 }
 0x22e   :  { %v742_v7 = vadd.f32 %v731_v6, %v728_v4  ;;  %v1087_v8 = vpop.f32.mrb[12].mxu0 }
 0x22f   :  { %v1088_v9 = vpop.f32.mrb[13].mxu0 }
 0x230   :  { %v1089_v10 = vadd.f32 %v1088_v9, %v1087_v8  ;;  %v1090_v11 = vpop.f32.mrb[14].mxu0 }
 0x231   :  { %v1091_v12 = vpop.f32.mrb[15].mxu0 }
 0x232   :  { %v736_v13 = vadd.f32 %v1151_v58, %v1089_v10  ;;  %v1092_v37 = vadd.f32 %v1091_v12, %v1090_v11 }
 0x234   :  { %v743_v14 = vadd.f32 %v742_v7, %v736_v13  ;;  %v739_v15 = vadd.f32 %v1152_v60, %v1092_v37 }
 0x236   :  { %v744_v16 = vadd.f32 %v743_v14, %v739_v15 }
 0x238   :  { %v745_v17 = vrot.slane %v744_v16, 4 }
 0x23a   :  { %v746_v18 = vadd.f32 %v745_v17, %v744_v16 }
 0x23c   :  { %v747_v19 = vrot.slane %v746_v18, 2 }
 0x23e   :  { %v748_v20 = vadd.f32 %v747_v19, %v746_v18  ;;  %v778_v18 = vsub.s32 2, %v1457_v55 }
 0x240   :  { %v749_v21 = vrot.slane %v748_v20, 1 }
 0x242   :  { %v750_v22 = vadd.f32 %v749_v21, %v748_v20  ;;  %v786_v20 = vsub.s32 3, %v1457_v55  ;;  %v779_v21 = vrot.slane %v1463_v57, %v778_v18 }
 0x244   :  { %v751_v23 = vmul.f32 0.03125, %v750_v22  ;;  %v787_v22 = vrot.slane %v1463_v57, %v786_v20 }
 0x246   :  { %v752_v25 = vsub.f32 %v728_v4, %v751_v23  ;;  %v753_v26 = vsub.f32 %v731_v6, %v751_v23  ;;  %v754_v27 = vsub.f32 %v736_v13, %v751_v23  ;;  %v755_v28 = vsub.f32 %v739_v15, %v751_v23  ;;  %v1171_v29 = vpop.f32.mrb[16].mxu0 }
 0x247   :  { %v894_v30 = vpop.f32.mrb[17].mxu0  ;;  %v945_v23 = vsub.s32 4, %v1457_v55 }
 0x248   :  { %v756_v31 = vmul.f32 %v752_v25, %v752_v25  ;;  %v757_v32 = vmul.f32 %v753_v26, %v753_v26  ;;  %v1172_v33 = vpop.f32.mrb[18].mxu0  ;;  %v758_v35 = vmul.f32 %v754_v27, %v754_v27  ;;  %v759_v39 = vmul.f32 %v755_v28, %v755_v28 }
 0x249   :  { %v897_v34 = vpop.f32.mrb[19].mxu0 }
 0x24a   :  { %v760_v36 = vadd.f32 %v757_v32, %v756_v31  ;;  %v909_v38 = vadd.f32 %v897_v34, %v894_v30 }
 0x24c   :  { %v761_v40 = vadd.f32 %v760_v36, %v758_v35  ;;  %v910_v41 = vadd.f32 %v1171_v29, %v909_v38 }
 0x24e   :  { %v762_v42 = vadd.f32 %v761_v40, %v759_v39  ;;  %v911_v43 = vadd.f32 %v1172_v33, %v910_v41 }
 0x250   :  { %v763_v44 = vrot.slane %v762_v42, 4  ;;  %v912_v45 = vrot.slane %v911_v43, 4 }
 0x252   :  { %v764_v46 = vadd.f32 %v763_v44, %v762_v42  ;;  %v913_v47 = vadd.f32 %v912_v45, %v911_v43 }
 0x254   :  { %v765_v48 = vrot.slane %v764_v46, 2  ;;  %v914_v49 = vrot.slane %v913_v47, 2 }
 0x256   :  { %v766_v50 = vadd.f32 %v765_v48, %v764_v46  ;;  %v915_v51 = vadd.f32 %v914_v49, %v913_v47 }
 0x258   :  { %v767_v52 = vrot.slane %v766_v50, 1  ;;  %v916_v53 = vrot.slane %v915_v51, 1 }
 0x25a   :  { %v768_v2 = vadd.f32 %v767_v52, %v766_v50  ;;  %v917_v54 = vadd.f32 %v916_v53, %v915_v51 }
 0x25c   :  { %v769_v56 = vmul.f32 0.03125, %v768_v2  ;;  %v918_v24 = vmul.f32 0.03125, %v917_v54 }
 0x25e   :  { %v770_v58 = vadd.f32 1e-05, %v769_v56  ;;  %v919_v59 = vsub.f32 %v894_v30, %v918_v24  ;;  %v920_v60 = vsub.f32 %v897_v34, %v918_v24  ;;  %v921_v61 = vsub.f32 %v1171_v29, %v918_v24 }
 0x25f   :  { %v922_v62 = vsub.f32 %v1172_v33, %v918_v24  ;;  %v946_v30 = vrot.slane %v1463_v57, %v945_v23 }
 0x260   :  { %1231 = vrsqrt.f32 %v770_v58  ;;  %v923_v63 = vmul.f32 %v919_v59, %v919_v59  ;;  %v924_v0 = vmul.f32 %v920_v60, %v920_v60  ;;  %v925_v1 = vmul.f32 %v921_v61, %v921_v61 }
 0x261   :  { %v926_v4 = vmul.f32 %v922_v62, %v922_v62 }
 0x262   :  { %v927_v3 = vadd.f32 %v924_v0, %v923_v63 }
 0x264   :  { %v928_v5 = vadd.f32 %v927_v3, %v925_v1 }
 0x266   :  { %v929_v6 = vadd.f32 %v928_v5, %v926_v4 }
 0x268   :  { %v930_v7 = vrot.slane %v929_v6, 4 }
 0x26a   :  { %v1232_v8 = vpop.eup %1231  ;;  %v931_v9 = vadd.f32 %v930_v7, %v929_v6 }
 0x26b   :  { %v772_v10 = vmul.f32 %v1232_v8, %v752_v25  ;;  %v774_v11 = vmul.f32 %v1232_v8, %v754_v27  ;;  %v775_v12 = vmul.f32 %v1232_v8, %v755_v28  ;;  %v773_v13 = vmul.f32 %v1232_v8, %v753_v26 }
 0x26c   :  { %v932_v37 = vrot.slane %v931_v9, 2  ;;  %v953_v25 = vsub.s32 5, %v1457_v55 }
 0x26d   :  { %v780_v26 = vmul.f32 %v779_v21, %v772_v10  ;;  %v782_v27 = vmul.f32 %v779_v21, %v774_v11  ;;  %v783_v28 = vmul.f32 %v779_v21, %v775_v12  ;;  %v781_v29 = vmul.f32 %v779_v21, %v773_v13 }
 0x26e   :  { %v933_v14 = vadd.f32 %v932_v37, %v931_v9  ;;  %v954_v31 = vrot.slane %v1463_v57, %v953_v25 }
 0x26f   :  { %v790_v33 = vadd.f32 %v787_v22, %v782_v27  ;;  %v791_v34 = vadd.f32 %v787_v22, %v783_v28  ;;  %v788_v35 = vadd.f32 %v787_v22, %v780_v26  ;;  %v789_v36 = vadd.f32 %v787_v22, %v781_v29 }
 0x270   :  { %v934_v15 = vrot.slane %v933_v14, 1 }
 0x271   :  { %v795_v45 = vmax.f32 %v791_v34, 0.0  ;;  %v792_v46 = vmax.f32 %v788_v35, 0.0  ;;  %v793_v47 = vmax.f32 %v789_v36, 0.0  ;;  %v794_v48 = vmax.f32 %v790_v33, 0.0 }
 0x272   :  { %v935_v16 = vadd.f32 %v934_v15, %v933_v14 }
 0x274   :  { %v936_v17 = vmul.f32 0.03125, %v935_v16 }
 0x276   :  { %v937_v19 = vadd.f32 1e-05, %v936_v17 }
 0x278   :  { %1233 = vrsqrt.f32 %v937_v19 }
 0x282   :  { %v1234_v32 = vpop.eup %1233 }
 0x283   :  { %v939_v38 = vmul.f32 %v1234_v32, %v919_v59  ;;  %v940_v39 = vmul.f32 %v1234_v32, %v920_v60  ;;  %v941_v40 = vmul.f32 %v1234_v32, %v921_v61  ;;  %v942_v41 = vmul.f32 %v1234_v32, %v922_v62 }
 0x285   :  { %v947_v42 = vmul.f32 %v946_v30, %v939_v38  ;;  %v948_v43 = vmul.f32 %v946_v30, %v940_v39  ;;  %v949_v55 = vmul.f32 %v946_v30, %v941_v40  ;;  %v950_v44 = vmul.f32 %v946_v30, %v942_v41 }
 0x287   :  { %v955_v49 = vadd.f32 %v954_v31, %v947_v42  ;;  %v956_v50 = vadd.f32 %v954_v31, %v948_v43  ;;  %v957_v57 = vadd.f32 %v954_v31, %v949_v55  ;;  %v958_v51 = vadd.f32 %v954_v31, %v950_v44 }
 0x289   :  { %v959_v52 = vadd.f32 %v955_v49, %v792_v46  ;;  %v960_v53 = vadd.f32 %v956_v50, %v793_v47  ;;  %v961_v2 = vadd.f32 %v957_v57, %v794_v48  ;;  %v962_v54 = vadd.f32 %v958_v51, %v795_v45 }
 0x28b   :  { %963 = vst [vmem:[%s1517_s5] sm:$0xff] %v959_v52  ;;  %964 = vst [vmem:[%s1517_s5 + $0x8] sm:$0xff] %v960_v53 }
 0x28c   :  { %965 = vst [vmem:[%s1517_s5 + $0x10] sm:$0xff] %v961_v2  ;;  %966 = vst [vmem:[%s1517_s5 + $0x18] sm:$0xff] %v962_v54 }

</bundles_post_ra>
